<compile_context>
chip_gen: v7x
topology: tpu7x:2x2x1
jax: 0.10.0
libtpu: 0.0.40
codegen_flags: <defaults>
</compile_context>

<pallas_src>
import jax
import jax.numpy as jnp
from jax.experimental import pallas as pl
from jax.experimental.pallas import tpu as pltpu

LANE = 128      # hidden width == vreg lane width
G_PAD = 8       # pooled-output rows padded to one full sublane group
F_IN_PAD = 8    # conv1 input features padded 3 -> 8
OUT_DIM = 9     # final Linear(32, 9) output width


# ----------------------------- Pallas kernel --------------------------------

def _gcn_x_fused_kernel(a_ref, x_ref, pa_ref, w1_ref, w23_ref, w4_ref,
                        w5_ref, w6_ref, b_ref, o_ref):
    """Whole GCN_x forward pass, VMEM-resident.

    a_ref:   [Np, Np]       GCN-normalized adjacency (rows/cols zero-padded)
    x_ref:   [Np, 8]        node features, F_in (3) zero-padded to 8 lanes
    pa_ref:  [8,  Np]       (mean-pool @ A_hat), graph rows zero-padded to 8
    w1_ref:  [8, 128]       conv1 weight, rows zero-padded 3 -> 8
    w23_ref: [2, 128, 128]  conv2 / conv3 weights
    w4_ref:  [128, 64]      conv4 weight
    w5_ref:  [64, 32]       lin1 weight
    w6_ref:  [32, 128]      lin weight, cols zero-padded 9 -> 128
    b_ref:   [8, 128]       stacked zero-padded biases (rows 0..5 used)
    o_ref:   [8, 128]       padded output; real result is o[:G, :9]
    """
    a = a_ref[...]

    # conv1: relu(A @ (X @ W1) + b1)  (zero-padded X cols / W1 rows are exact)
    hw = jnp.dot(x_ref[...], w1_ref[...], preferred_element_type=jnp.float32)
    h = jnp.dot(a, hw, preferred_element_type=jnp.float32) + b_ref[0:1, :]
    h = jnp.maximum(h, 0.0)

    # conv2 / conv3: relu(A @ (H @ W) + b)
    for li in range(2):
        hw = jnp.dot(h, w23_ref[li], preferred_element_type=jnp.float32)
        h = jnp.dot(a, hw, preferred_element_type=jnp.float32) + b_ref[li + 1:li + 2, :]
        h = jnp.maximum(h, 0.0)

    # conv4 folded with global_mean_pool (pool rows sum to 1, so the node-wise
    # bias survives pooling unchanged):  g = PA @ (H @ W4) + b4
    hw = jnp.dot(h, w4_ref[...], preferred_element_type=jnp.float32)     # [Np, 64]
    g = jnp.dot(pa_ref[...], hw, preferred_element_type=jnp.float32)     # [8, 64]
    g = g + b_ref[3:4, :w4_ref.shape[1]]

    # TODO(synk): F.dropout(p=0.3) treated as inference-mode identity (no RNG state).

    # lin1 (ReLU) then lin; lin cols zero-padded to 128 keep the single output
    # store a full unmasked vreg row.
    g = jnp.dot(g, w5_ref[...], preferred_element_type=jnp.float32) \
        + b_ref[4:5, :w5_ref.shape[1]]
    g = jnp.maximum(g, 0.0)
    g = jnp.dot(g, w6_ref[...], preferred_element_type=jnp.float32) + b_ref[5:6, :]

    o_ref[...] = g.astype(o_ref.dtype)


# ------------------------------ wrappers --------------------------------------

def _full_spec(shape):
    # whole-array block (block_shape == array shape) -> single VMEM tile
    return pl.BlockSpec(shape, lambda i: (0,) * len(shape))


def _pad2(x, rows, cols):
    return jnp.pad(x, ((0, rows - x.shape[0]), (0, cols - x.shape[1])))


@jax.jit
def _forward_padded(a_pad, x_pad, pa_pad, w1, w23, w4, w5, w6, b_stack):
    """Single fused pallas_call over already-padded, device-resident arrays."""
    return pl.pallas_call(
        _gcn_x_fused_kernel,
        out_shape=jax.ShapeDtypeStruct((G_PAD, LANE), jnp.float32),
        grid=(1,),
        in_specs=[_full_spec(a_pad.shape), _full_spec(x_pad.shape),
                  _full_spec(pa_pad.shape), _full_spec(w1.shape),
                  _full_spec(w23.shape), _full_spec(w4.shape),
                  _full_spec(w5.shape), _full_spec(w6.shape),
                  _full_spec(b_stack.shape)],
        out_specs=_full_spec((G_PAD, LANE)),
        compiler_params=pltpu.CompilerParams(
            dimension_semantics=("arbitrary",)),
    )(a_pad, x_pad, pa_pad, w1, w23, w4, w5, w6, b_stack)


def prepare_gcn_x(params, x, a_hat, p_mat):
    """One-time prep (hoisted out of the forward): pad / stack everything and
    precompute PA = P @ A_hat on device."""
    n = a_hat.shape[0]
    n_pad = -(-n // 8) * 8                     # sublane-aligned node count
    num_graphs = p_mat.shape[0]

    a_pad = _pad2(a_hat.astype(jnp.float32), n_pad, n_pad)          # [Np, Np]
    x_pad = _pad2(x.astype(jnp.float32), n_pad, F_IN_PAD)           # [Np, 8]

    # Fold the mean-pool into conv4 (computed once here).
    pa = p_mat.astype(jnp.float32) @ a_hat.astype(jnp.float32)      # [G, N]
    pa_pad = _pad2(pa, G_PAD, n_pad)                                # [8, Np]

    w1 = _pad2(params["conv1"]["w"].astype(jnp.float32), F_IN_PAD, LANE)    # [8,128]
    w23 = jnp.stack([params["conv2"]["w"].astype(jnp.float32),
                     params["conv3"]["w"].astype(jnp.float32)])             # [2,128,128]
    w4 = params["conv4"]["w"].astype(jnp.float32)                           # [128,64]
    w5 = params["lin1"]["w"].astype(jnp.float32)                            # [64,32]
    w6 = _pad2(params["lin"]["w"].astype(jnp.float32), 32, LANE)            # [32,128]

    names = ["conv1", "conv2", "conv3", "conv4", "lin1", "lin"]
    b_rows = [jnp.pad(params[nm]["b"].astype(jnp.float32),
                      (0, LANE - params[nm]["b"].shape[0])) for nm in names]
    b_rows += [jnp.zeros((LANE,), jnp.float32)] * (G_PAD - len(names))
    b_stack = jnp.stack(b_rows)                                             # [8,128]

    arrays = (a_pad, x_pad, pa_pad, w1, w23, w4, w5, w6, b_stack)
    arrays = tuple(jax.device_put(v) for v in arrays)
    return arrays, num_graphs


def gcn_x_forward(prepped, num_graphs):
    out_pad = _forward_padded(*prepped)
    return out_pad[:num_graphs, :OUT_DIM]                           # [G, 9]


# ----------------------------- model pieces ----------------------------------

def build_normalized_adj(edge_index, num_nodes):
    """Dense GCN normalization: D^-1/2 (A + I) D^-1/2 (self-loops added)."""
    src, dst = edge_index[0], edge_index[1]
    a = jnp.zeros((num_nodes, num_nodes), jnp.float32).at[src, dst].set(1.0)
    a = a + jnp.eye(num_nodes, dtype=jnp.float32)
    deg = a.sum(axis=1)
    d_inv_sqrt = jnp.where(deg > 0, jax.lax.rsqrt(deg), 0.0)
    return d_inv_sqrt[:, None] * a * d_inv_sqrt[None, :]


def build_pool_matrix(batch, num_graphs, num_nodes):
    onehot = jax.nn.one_hot(batch, num_graphs, dtype=jnp.float32)   # [N, G]
    counts = jnp.maximum(onehot.sum(axis=0), 1.0)                   # [G]
    return (onehot / counts[None, :]).T                             # [G, N]


def init_params(key):
    def glorot(k, shape):
        limit = (6.0 / (shape[0] + shape[1])) ** 0.5
        return jax.random.uniform(k, shape, jnp.float32, -limit, limit)

    ks = jax.random.split(key, 6)
    dims = [(3, 128), (128, 128), (128, 128), (128, 64), (64, 32), (32, 9)]
    names = ["conv1", "conv2", "conv3", "conv4", "lin1", "lin"]
    params = {}
    for name, k, (fi, fo) in zip(names, ks, dims):
        params[name] = {"w": glorot(k, (fi, fo)), "b": jnp.zeros((fo,), jnp.float32)}
    return params


# --------------------------------- main ---------------------------------------

if __name__ == "__main__":
    key = jax.random.PRNGKey(0)
    k_x, k_p = jax.random.split(key)

    N = 16          # total nodes (2 graphs x 8 nodes)
    G = 2           # graphs in the batch
    F_IN = 3        # GCNConv(3, 128) input dim

    # Node features [N, 3]
    x = jax.random.normal(k_x, (N, F_IN), jnp.float32)

    # Two 8-node ring graphs (undirected: both directions listed), [2, E]
    def ring_edges(offset, n):
        src = jnp.arange(n) + offset
        dst = (jnp.arange(n) + 1) % n + offset
        return jnp.stack([jnp.concatenate([src, dst]),
                          jnp.concatenate([dst, src])], axis=0)

    edge_index = jnp.concatenate(
        [ring_edges(0, 8), ring_edges(8, 8)], axis=1).astype(jnp.int32)   # [2, 32]

    # Graph assignment per node
    batch = jnp.concatenate(
        [jnp.zeros((8,), jnp.int32), jnp.ones((8,), jnp.int32)])          # [16]

    a_hat = build_normalized_adj(edge_index, N)       # [N, N]
    p_mat = build_pool_matrix(batch, G, N)            # [G, N]
    params = init_params(k_p)

    # One-time prep (padding / stacking / PA precompute), then the fused kernel.
    prepped, num_graphs = prepare_gcn_x(params, x, a_hat, p_mat)
    out = gcn_x_forward(prepped, num_graphs)          # [G, 9]
    out = jax.block_until_ready(out)
    assert out.shape == (G, 9) and out.dtype == jnp.float32
    assert bool(jnp.all(jnp.isfinite(out)))
    print("KERNEL_OK")
</pallas_src>

<mosaic_0001>
module attributes {stable_mosaic.version = 11 : i64} {
  func.func @_gcn_x_fused_kernel(%arg0: i32, %arg1: memref<16x16xf32, #tpu.memory_space<vmem>>, %arg2: memref<16x8xf32, #tpu.memory_space<vmem>>, %arg3: memref<8x16xf32, #tpu.memory_space<vmem>>, %arg4: memref<8x128xf32, #tpu.memory_space<vmem>>, %arg5: memref<2x128x128xf32, #tpu.memory_space<vmem>>, %arg6: memref<128x64xf32, #tpu.memory_space<vmem>>, %arg7: memref<64x32xf32, #tpu.memory_space<vmem>>, %arg8: memref<32x128xf32, #tpu.memory_space<vmem>>, %arg9: memref<8x128xf32, #tpu.memory_space<vmem>>, %arg10: memref<8x128xf32, #tpu.memory_space<vmem>>) attributes {dimension_semantics = [#tpu.dimension_semantics<arbitrary>], iteration_bounds = array<i64: 1>, scalar_prefetch = 0 : i64, scratch_operands = 0 : i64, tpu.core_type = #tpu.core_type<tc>, window_params = [{pipeline_mode = #tpu.pipeline_mode<synchronous>, transform_indices = @transform_0, window_bounds = array<i64: 16, 16>}, {pipeline_mode = #tpu.pipeline_mode<synchronous>, transform_indices = @transform_1, window_bounds = array<i64: 16, 8>}, {pipeline_mode = #tpu.pipeline_mode<synchronous>, transform_indices = @transform_2, window_bounds = array<i64: 8, 16>}, {pipeline_mode = #tpu.pipeline_mode<synchronous>, transform_indices = @transform_3, window_bounds = array<i64: 8, 128>}, {pipeline_mode = #tpu.pipeline_mode<synchronous>, transform_indices = @transform_4, window_bounds = array<i64: 2, 128, 128>}, {pipeline_mode = #tpu.pipeline_mode<synchronous>, transform_indices = @transform_5, window_bounds = array<i64: 128, 64>}, {pipeline_mode = #tpu.pipeline_mode<synchronous>, transform_indices = @transform_6, window_bounds = array<i64: 64, 32>}, {pipeline_mode = #tpu.pipeline_mode<synchronous>, transform_indices = @transform_7, window_bounds = array<i64: 32, 128>}, {pipeline_mode = #tpu.pipeline_mode<synchronous>, transform_indices = @transform_8, window_bounds = array<i64: 8, 128>}, {pipeline_mode = #tpu.pipeline_mode<synchronous>, transform_indices = @transform_9, window_bounds = array<i64: 8, 128>}]} {
    %c0 = arith.constant 0 : index
    %c0_0 = arith.constant 0 : index
    %0 = vector.load %arg1[%c0, %c0_0] : memref<16x16xf32, #tpu.memory_space<vmem>>, vector<16x16xf32>
    %c0_1 = arith.constant 0 : index
    %c0_2 = arith.constant 0 : index
    %1 = vector.load %arg2[%c0_1, %c0_2] : memref<16x8xf32, #tpu.memory_space<vmem>>, vector<16x8xf32>
    %c0_3 = arith.constant 0 : index
    %c0_4 = arith.constant 0 : index
    %2 = vector.load %arg4[%c0_3, %c0_4] : memref<8x128xf32, #tpu.memory_space<vmem>>, vector<8x128xf32>
    %cst = arith.constant dense<0.000000e+00> : vector<16x128xf32>
    %3 = tpu.matmul %1, %2, %cst {dimension_numbers = #tpu.dot_dimension_numbers<[1], [0], [0], [1], [0, 0, 1, 1], [], []>} : vector<16x8xf32>, vector<8x128xf32>, vector<16x128xf32> -> vector<16x128xf32>
    %cst_5 = arith.constant dense<0.000000e+00> : vector<16x128xf32>
    %4 = tpu.matmul %0, %3, %cst_5 {dimension_numbers = #tpu.dot_dimension_numbers<[1], [0], [0], [1], [0, 0, 1, 1], [], []>} : vector<16x16xf32>, vector<16x128xf32>, vector<16x128xf32> -> vector<16x128xf32>
    %c0_6 = arith.constant 0 : index
    %c0_7 = arith.constant 0 : index
    %5 = vector.load %arg9[%c0_6, %c0_7] : memref<8x128xf32, #tpu.memory_space<vmem>>, vector<1x128xf32>
    %6 = vector.broadcast %5 : vector<1x128xf32> to vector<16x128xf32>
    %7 = arith.addf %4, %6 : vector<16x128xf32>
    %cst_8 = arith.constant 0.000000e+00 : f32
    %8 = vector.broadcast %cst_8 : f32 to vector<16x128xf32>
    %9 = arith.maximumf %7, %8 : vector<16x128xf32>
    %c0_9 = arith.constant 0 : index
    %c0_10 = arith.constant 0 : index
    %c0_11 = arith.constant 0 : index
    %10 = vector.load %arg5[%c0_9, %c0_10, %c0_11] : memref<2x128x128xf32, #tpu.memory_space<vmem>>, vector<1x128x128xf32>
    %11 = vector.shape_cast %10 : vector<1x128x128xf32> to vector<128x128xf32>
    %cst_12 = arith.constant dense<0.000000e+00> : vector<16x128xf32>
    %12 = tpu.matmul %9, %11, %cst_12 {dimension_numbers = #tpu.dot_dimension_numbers<[1], [0], [0], [1], [0, 0, 1, 1], [], []>} : vector<16x128xf32>, vector<128x128xf32>, vector<16x128xf32> -> vector<16x128xf32>
    %cst_13 = arith.constant dense<0.000000e+00> : vector<16x128xf32>
    %13 = tpu.matmul %0, %12, %cst_13 {dimension_numbers = #tpu.dot_dimension_numbers<[1], [0], [0], [1], [0, 0, 1, 1], [], []>} : vector<16x16xf32>, vector<16x128xf32>, vector<16x128xf32> -> vector<16x128xf32>
    %c1 = arith.constant 1 : index
    %c0_14 = arith.constant 0 : index
    %14 = vector.load %arg9[%c1, %c0_14] : memref<8x128xf32, #tpu.memory_space<vmem>>, vector<1x128xf32>
    %15 = vector.broadcast %14 : vector<1x128xf32> to vector<16x128xf32>
    %16 = arith.addf %13, %15 : vector<16x128xf32>
    %cst_15 = arith.constant 0.000000e+00 : f32
    %17 = vector.broadcast %cst_15 : f32 to vector<16x128xf32>
    %18 = arith.maximumf %16, %17 : vector<16x128xf32>
    %c1_16 = arith.constant 1 : index
    %c0_17 = arith.constant 0 : index
    %c0_18 = arith.constant 0 : index
    %19 = vector.load %arg5[%c1_16, %c0_17, %c0_18] : memref<2x128x128xf32, #tpu.memory_space<vmem>>, vector<1x128x128xf32>
    %20 = vector.shape_cast %19 : vector<1x128x128xf32> to vector<128x128xf32>
    %cst_19 = arith.constant dense<0.000000e+00> : vector<16x128xf32>
    %21 = tpu.matmul %18, %20, %cst_19 {dimension_numbers = #tpu.dot_dimension_numbers<[1], [0], [0], [1], [0, 0, 1, 1], [], []>} : vector<16x128xf32>, vector<128x128xf32>, vector<16x128xf32> -> vector<16x128xf32>
    %cst_20 = arith.constant dense<0.000000e+00> : vector<16x128xf32>
    %22 = tpu.matmul %0, %21, %cst_20 {dimension_numbers = #tpu.dot_dimension_numbers<[1], [0], [0], [1], [0, 0, 1, 1], [], []>} : vector<16x16xf32>, vector<16x128xf32>, vector<16x128xf32> -> vector<16x128xf32>
    %c2 = arith.constant 2 : index
    %c0_21 = arith.constant 0 : index
    %23 = vector.load %arg9[%c2, %c0_21] : memref<8x128xf32, #tpu.memory_space<vmem>>, vector<1x128xf32>
    %24 = vector.broadcast %23 : vector<1x128xf32> to vector<16x128xf32>
    %25 = arith.addf %22, %24 : vector<16x128xf32>
    %cst_22 = arith.constant 0.000000e+00 : f32
    %26 = vector.broadcast %cst_22 : f32 to vector<16x128xf32>
    %27 = arith.maximumf %25, %26 : vector<16x128xf32>
    %c0_23 = arith.constant 0 : index
    %c0_24 = arith.constant 0 : index
    %28 = vector.load %arg6[%c0_23, %c0_24] : memref<128x64xf32, #tpu.memory_space<vmem>>, vector<128x64xf32>
    %cst_25 = arith.constant dense<0.000000e+00> : vector<16x64xf32>
    %29 = tpu.matmul %27, %28, %cst_25 {dimension_numbers = #tpu.dot_dimension_numbers<[1], [0], [0], [1], [0, 0, 1, 1], [], []>} : vector<16x128xf32>, vector<128x64xf32>, vector<16x64xf32> -> vector<16x64xf32>
    %c0_26 = arith.constant 0 : index
    %c0_27 = arith.constant 0 : index
    %30 = vector.load %arg3[%c0_26, %c0_27] : memref<8x16xf32, #tpu.memory_space<vmem>>, vector<8x16xf32>
    %cst_28 = arith.constant dense<0.000000e+00> : vector<8x64xf32>
    %31 = tpu.matmul %30, %29, %cst_28 {dimension_numbers = #tpu.dot_dimension_numbers<[1], [0], [0], [1], [0, 0, 1, 1], [], []>} : vector<8x16xf32>, vector<16x64xf32>, vector<8x64xf32> -> vector<8x64xf32>
    %c3 = arith.constant 3 : index
    %c0_29 = arith.constant 0 : index
    %32 = vector.load %arg9[%c3, %c0_29] : memref<8x128xf32, #tpu.memory_space<vmem>>, vector<1x64xf32>
    %33 = vector.broadcast %32 : vector<1x64xf32> to vector<8x64xf32>
    %34 = arith.addf %31, %33 : vector<8x64xf32>
    %c0_30 = arith.constant 0 : index
    %c0_31 = arith.constant 0 : index
    %35 = vector.load %arg7[%c0_30, %c0_31] : memref<64x32xf32, #tpu.memory_space<vmem>>, vector<64x32xf32>
    %cst_32 = arith.constant dense<0.000000e+00> : vector<8x32xf32>
    %36 = tpu.matmul %34, %35, %cst_32 {dimension_numbers = #tpu.dot_dimension_numbers<[1], [0], [0], [1], [0, 0, 1, 1], [], []>} : vector<8x64xf32>, vector<64x32xf32>, vector<8x32xf32> -> vector<8x32xf32>
    %c4 = arith.constant 4 : index
    %c0_33 = arith.constant 0 : index
    %37 = vector.load %arg9[%c4, %c0_33] : memref<8x128xf32, #tpu.memory_space<vmem>>, vector<1x32xf32>
    %38 = vector.broadcast %37 : vector<1x32xf32> to vector<8x32xf32>
    %39 = arith.addf %36, %38 : vector<8x32xf32>
    %cst_34 = arith.constant 0.000000e+00 : f32
    %40 = vector.broadcast %cst_34 : f32 to vector<8x32xf32>
    %41 = arith.maximumf %39, %40 : vector<8x32xf32>
    %c0_35 = arith.constant 0 : index
    %c0_36 = arith.constant 0 : index
    %42 = vector.load %arg8[%c0_35, %c0_36] : memref<32x128xf32, #tpu.memory_space<vmem>>, vector<32x128xf32>
    %cst_37 = arith.constant dense<0.000000e+00> : vector<8x128xf32>
    %43 = tpu.matmul %41, %42, %cst_37 {dimension_numbers = #tpu.dot_dimension_numbers<[1], [0], [0], [1], [0, 0, 1, 1], [], []>} : vector<8x32xf32>, vector<32x128xf32>, vector<8x128xf32> -> vector<8x128xf32>
    %c5 = arith.constant 5 : index
    %c0_38 = arith.constant 0 : index
    %44 = vector.load %arg9[%c5, %c0_38] : memref<8x128xf32, #tpu.memory_space<vmem>>, vector<1x128xf32>
    %45 = vector.broadcast %44 : vector<1x128xf32> to vector<8x128xf32>
    %46 = arith.addf %43, %45 : vector<8x128xf32>
    %c0_39 = arith.constant 0 : index
    %c0_40 = arith.constant 0 : index
    %47 = vector.load %arg10[%c0_39, %c0_40] : memref<8x128xf32, #tpu.memory_space<vmem>>, vector<8x128xf32>
    tpu.vector_store %arg10[%c0_39, %c0_40], %46 {strides = array<i32>} : memref<8x128xf32, #tpu.memory_space<vmem>>, vector<8x128xf32>,
    return
  }
  func.func @transform_0(%arg0: i32) -> (i32, i32) {
    %c0_i32 = arith.constant 0 : i32
    %c0_i32_0 = arith.constant 0 : i32
    %c0_i32_1 = arith.constant 0 : i32
    return %c0_i32, %c0_i32_0 : i32, i32
  }
  func.func @transform_1(%arg0: i32) -> (i32, i32) {
    %c0_i32 = arith.constant 0 : i32
    %c0_i32_0 = arith.constant 0 : i32
    %c0_i32_1 = arith.constant 0 : i32
    return %c0_i32, %c0_i32_0 : i32, i32
  }
  func.func @transform_2(%arg0: i32) -> (i32, i32) {
    %c0_i32 = arith.constant 0 : i32
    %c0_i32_0 = arith.constant 0 : i32
    %c0_i32_1 = arith.constant 0 : i32
    return %c0_i32, %c0_i32_0 : i32, i32
  }
  func.func @transform_3(%arg0: i32) -> (i32, i32) {
    %c0_i32 = arith.constant 0 : i32
    %c0_i32_0 = arith.constant 0 : i32
    %c0_i32_1 = arith.constant 0 : i32
    return %c0_i32, %c0_i32_0 : i32, i32
  }
  func.func @transform_4(%arg0: i32) -> (i32, i32, i32) {
    %c0_i32 = arith.constant 0 : i32
    %c0_i32_0 = arith.constant 0 : i32
    %c0_i32_1 = arith.constant 0 : i32
    %c0_i32_2 = arith.constant 0 : i32
    return %c0_i32, %c0_i32_0, %c0_i32_1 : i32, i32, i32
  }
  func.func @transform_5(%arg0: i32) -> (i32, i32) {
    %c0_i32 = arith.constant 0 : i32
    %c0_i32_0 = arith.constant 0 : i32
    %c0_i32_1 = arith.constant 0 : i32
    return %c0_i32, %c0_i32_0 : i32, i32
  }
  func.func @transform_6(%arg0: i32) -> (i32, i32) {
    %c0_i32 = arith.constant 0 : i32
    %c0_i32_0 = arith.constant 0 : i32
    %c0_i32_1 = arith.constant 0 : i32
    return %c0_i32, %c0_i32_0 : i32, i32
  }
  func.func @transform_7(%arg0: i32) -> (i32, i32) {
    %c0_i32 = arith.constant 0 : i32
    %c0_i32_0 = arith.constant 0 : i32
    %c0_i32_1 = arith.constant 0 : i32
    return %c0_i32, %c0_i32_0 : i32, i32
  }
  func.func @transform_8(%arg0: i32) -> (i32, i32) {
    %c0_i32 = arith.constant 0 : i32
    %c0_i32_0 = arith.constant 0 : i32
    %c0_i32_1 = arith.constant 0 : i32
    return %c0_i32, %c0_i32_0 : i32, i32
  }
  func.func @transform_9(%arg0: i32) -> (i32, i32) {
    %c0_i32 = arith.constant 0 : i32
    %c0_i32_0 = arith.constant 0 : i32
    %c0_i32_1 = arith.constant 0 : i32
    return %c0_i32, %c0_i32_0 : i32, i32
  }
}

</mosaic_0001>

<bundles_post_ra>
// kernel: _forward_padded.1
= control target key start
LH: loop header
LB: loop body
LE: loop exit
PB: predicated region body
PF: predicated region fallthrough
CT: control target
= control target key end

     0   :  { %14 = vsyncpa [#allocation3], 0  ;;  %s1796_s0 = inlined_call_operand.hbm [shape: f32[16,16], index: 0, kind: input, shape index: {}]   ;;  %s1797_s1 = inlined_call_operand.vmem [shape: f32[16,8], index: 1, kind: input, shape index: {}]   ;;  %s1798_s2 = inlined_call_operand.vmem [shape: f32[8,16], index: 2, kind: input, shape index: {}]   ;;  %s1799_s3 = inlined_call_operand.hbm [shape: f32[8,128], index: 3, kind: input, shape index: {}]   ;;  %s1800_s4 = inlined_call_operand.vmem [shape: f32[2,128,128], index: 4, kind: input, shape index: {}]   ;;  %s1801_s5 = inlined_call_operand.vmem [shape: f32[128,64], index: 5, kind: input, shape index: {}]   ;;  %s1802_s6 = inlined_call_operand.vmem [shape: f32[64,32], index: 6, kind: input, shape index: {}]   ;;  %s1803_s7 = inlined_call_operand.hbm [shape: f32[32,128], index: 7, kind: input, shape index: {}]   ;;  %s1804_s8 = inlined_call_operand.vmem [shape: f32[8,128], index: 8, kind: input, shape index: {}]   ;;  %s1805_s9 = inlined_call_operand.hbm [shape: f32[8,128], index: 9, kind: output, shape index: {}]  }
   0x1   :  { %15 = vsyncpa [#allocation6], 0 }
   0x2   :  { %16 = vsyncpa [#allocation4], 0  ;;  %s1472_s30 = smov [#allocation5]   ;;  %s1473_s11 = smov [#allocation2]  }
   0x3   :  { %s39_s10 = sshll.u32 %s1472_s30, 4  ;;  %s22_s12 = sshll.u32 %s1473_s11, 4  ;;  %s40_s10 = int_to_ptr.vmem [resolvable:$true] %s39_s10  ;;  %s1531_s12 = int_to_ptr.vmem [resolvable:$true] %s22_s12 }
   0x4   :  { %s1378_s15 = scalar_lea.hbm %s1799_s3, 128 }
   0x5   :  { %p1379_p0 = scmp.ne.s32.totalorder %s1799_s3, %s1378_s15  ;;  %p1382_p1 = scmp.lt.u32.totalorder %s1378_s15, %s1799_s3 }
   0x7   :  { %p1384_p2 = pnand %p1382_p1, %p1379_p0 }
   0x9   :  { %1387 = shalt.err (!%p1384_p2)
}
   0xa   :  { %s1388_s20 = scalar_lea.vmem %s40_s10, 128  ;;  %p1393_p4 = scmp.lt.s32.totalorder %s40_s10, %s40_s10 }
   0xb   :  { %p1389_p3 = scmp.ne.s32.totalorder %s40_s10, %s1388_s20  ;;  %p1394_p5 = scmp.lt.s32.totalorder %s1388_s20, %s1388_s20 }
   0xd   :  { %p1395_p6 = por %p1394_p5, %p1393_p4 }
   0xf   :  { %p1396_p7 = pnand %p1395_p6, %p1389_p3 }
  0x11   :  { %1399 = shalt.err (!%p1396_p7)
}
  0x12   :  { %42 = dma.hbm_to_vmem [thread:$0]  %s1799_s3, 128, %s40_s10, [#allocation6]  }
  0x13   :  { %s1400_s25 = scalar_lea.hbm %s1796_s0, 256 }
  0x14   :  { %p1401_p8 = scmp.ne.s32.totalorder %s1796_s0, %s1400_s25  ;;  %p1404_p9 = scmp.lt.u32.totalorder %s1400_s25, %s1796_s0 }
  0x16   :  { %p1406_p10 = pnand %p1404_p9, %p1401_p8 }
  0x18   :  { %1409 = shalt.err (!%p1406_p10)
}
  0x19   :  { %s1410_s30 = scalar_lea.vmem %s1531_s12, 256  ;;  %p1415_p12 = scmp.lt.s32.totalorder %s1531_s12, %s1531_s12 }
  0x1a   :  { %p1411_p11 = scmp.ne.s32.totalorder %s1531_s12, %s1410_s30  ;;  %p1416_p13 = scmp.lt.s32.totalorder %s1410_s30, %s1410_s30 }
  0x1c   :  { %p1417_p0 = por %p1416_p13, %p1415_p12 }
  0x1e   :  { %p1418_p1 = pnand %p1417_p0, %p1411_p11 }
  0x20   :  { %1421 = shalt.err (!%p1418_p1)
}
  0x21   :  { %s1474_s3 = smov 128   ;;  %s1475_s10 = smov 8  }
  0x22   :  { %28 = dma.hbm_to_vmem [thread:$0]  %s1796_s0, 256, %s1531_s12, [#allocation3], %s1474_s3, %s1474_s3, %s1475_s10  }
  0x23   :  { %s1476_s14 = smov [#allocation7]   ;;  %s1422_s18 = scalar_lea.hbm %s1803_s7, 512 }
  0x24   :  { %s54_s15 = sshll.u32 %s1476_s14, 4  ;;  %p1423_p2 = scmp.ne.s32.totalorder %s1803_s7, %s1422_s18  ;;  %s55_s15 = int_to_ptr.vmem [resolvable:$true] %s54_s15 }
  0x25   :  { %p1426_p3 = scmp.lt.u32.totalorder %s1422_s18, %s1803_s7 }
  0x27   :  { %p1428_p4 = pnand %p1426_p3, %p1423_p2 }
  0x29   :  { %1431 = shalt.err (!%p1428_p4)
}
  0x2a   :  { %s1432_s23 = scalar_lea.vmem %s55_s15, 512  ;;  %p1437_p6 = scmp.lt.s32.totalorder %s55_s15, %s55_s15 }
  0x2b   :  { %p1433_p5 = scmp.ne.s32.totalorder %s55_s15, %s1432_s23  ;;  %p1438_p7 = scmp.lt.s32.totalorder %s1432_s23, %s1432_s23 }
  0x2d   :  { %p1439_p8 = por %p1438_p7, %p1437_p6 }
  0x2f   :  { %p1440_p9 = pnand %p1439_p8, %p1433_p5 }
  0x31   :  { %1443 = shalt.err (!%p1440_p9)
}
  0x32   :  { %60 = dma.hbm_to_vmem [thread:$0]  %s1803_s7, 512, %s55_s15, [#allocation6], %s1474_s3, %s1474_s3, %s1475_s10  }
  0x33   :  { %1466 = dma.done.wait [#allocation3], 256  }
  0x34   :  { %1467 = vsyncadd [#allocation3], 4294967040 }
  0x35   :  { %1468 = dma.done.wait [#allocation6], 640  }
  0x36   :  { %1469 = vsyncadd [#allocation6], 4294966656  ;;  %vm77_vm0 = vcmask 64512   ;;  %v76_v0 = vld [vmem:[#allocation5] sm:$0xff]  ;;  %v74_v1 = vld [vmem:[%s1797_s1] sm:$0xff]  ;;  %vm164_vm1 = vcmask 130048  }
  0x37   :  { %v75_v2 = vld [vmem:[%s1797_s1 + $0x8] sm:$0xff]  ;;  %1072 = vmatprep.subr.mxu0 %v76_v0  ;;  %1074 = vmatprep.mubr.msk.f32.mxu0 %vm77_vm0, %v74_v1  ;;  %v72_v3 = vld [vmem:[#allocation2] sm:$0xff]  ;;  %v250_v6 = vld [vmem:[%s1800_s4 + $0x10] sm:$0xff]  ;;  %vm1478_vm2 = vmmov 0   ;;  %vm778_vm3 = vcmask 523264   ;;  %vm862_vm4 = vcmask 261120  }
  0x38   :  { %1073 = vmatpush3.msra.mxu0 %v76_v0  ;;  %1081 = vmatprep.mubr.msk.f32.mxu1 %vm164_vm1, %v72_v3  ;;  %v248_v4 = vld [vmem:[%s1800_s4] sm:$0xff]  ;;  %v249_v5 = vld [vmem:[%s1800_s4 + $0x8] sm:$0xff]  ;;  %v251_v8 = vld [vmem:[%s1800_s4 + $0x18] sm:$0xff]  ;;  %s1480_s12 = smov [#allocation8]  }
  0x39   :  { %1075 = vmatmul.mubr.msk.f32.vlgmr.msra.gmra.mrb[0].mxu0 %vm77_vm0, %v75_v2  ;;  %v1244_v7 = vpack.c.bf16 %v249_v5, %v248_v4  ;;  %v1248_v9 = vpack.c.bf16 %v251_v8, %v250_v6  ;;  %v252_v10 = vld [vmem:[%s1800_s4 + $0x20] sm:$0xff]  ;;  %v253_v11 = vld [vmem:[%s1800_s4 + $0x28] sm:$0xff]  ;;  %v254_v13 = vld [vmem:[%s1800_s4 + $0x30] sm:$0xff]  ;;  %s943_s24 = sshll.u32 %s1480_s12, 4  ;;  %s944_s24 = int_to_ptr.vmem [resolvable:$true] %s943_s24 }
  0x3a   :  { %v1252_v12 = vpack.c.bf16 %v253_v11, %v252_v10  ;;  %v255_v14 = vld [vmem:[%s1800_s4 + $0x38] sm:$0xff]  ;;  %v256_v16 = vld [vmem:[%s1800_s4 + $0x40] sm:$0xff]  ;;  %v257_v17 = vld [vmem:[%s1800_s4 + $0x48] sm:$0xff]  ;;  %s1444_s25 = scalar_lea.vmem %s944_s24, 128  ;;  %p1449_p11 = scmp.lt.s32.totalorder %s944_s24, %s944_s24 }
  0x3b   :  { %1245 = vmatprep.subr.bf16.mxu0 %v1244_v7  ;;  %v1256_v15 = vpack.c.bf16 %v255_v14, %v254_v13  ;;  %v1260_v18 = vpack.c.bf16 %v257_v17, %v256_v16  ;;  %v258_v19 = vld [vmem:[%s1800_s4 + $0x50] sm:$0xff]  ;;  %v259_v20 = vld [vmem:[%s1800_s4 + $0x58] sm:$0xff]  ;;  %v260_v22 = vld [vmem:[%s1800_s4 + $0x60] sm:$0xff]  ;;  %p1445_p10 = scmp.ne.s32.totalorder %s944_s24, %s1444_s25  ;;  %p1450_p12 = scmp.lt.s32.totalorder %s1444_s25, %s1444_s25 }
  0x3c   :  { %1247 = vmatpush3.bf16.msra.mxu0 %v1244_v7  ;;  %v1264_v21 = vpack.c.bf16 %v259_v20, %v258_v19  ;;  %v261_v23 = vld [vmem:[%s1800_s4 + $0x68] sm:$0xff]  ;;  %v262_v29 = vld [vmem:[%s1800_s4 + $0x70] sm:$0xff]  ;;  %v263_v30 = vld [vmem:[%s1800_s4 + $0x78] sm:$0xff] }
  0x3d   :  { %1249 = vmatprep.subr.bf16.mxu0 %v1248_v9  ;;  %v1268_v24 = vpack.c.bf16 %v261_v23, %v260_v22  ;;  %v1623_v28 = vld [vmem:[#allocation2 + $0x8] sm:$0xff]  ;;  %v1272_v31 = vpack.c.bf16 %v263_v30, %v262_v29  ;;  %v955_v32 = vld [vmem:[%s1804_s8] ss:$0 sm:$0xff]  ;;  %v963_v45 = vld [vmem:[%s1800_s4 + $0x90] sm:$0xff]  ;;  %p1451_p13 = por %p1450_p12, %p1449_p11 }
  0x3e   :  { %v961_v39 = vld [vmem:[%s1800_s4 + $0x80] sm:$0xff]  ;;  %v962_v40 = vld [vmem:[%s1800_s4 + $0x88] sm:$0xff]  ;;  %v964_v46 = vld [vmem:[%s1800_s4 + $0x98] sm:$0xff] }
  0x3f   :  { %v1280_v44 = vpack.c.bf16 %v962_v40, %v961_v39  ;;  %v1284_v47 = vpack.c.bf16 %v964_v46, %v963_v45  ;;  %v965_v48 = vld [vmem:[%s1800_s4 + $0xa0] sm:$0xff]  ;;  %v966_v49 = vld [vmem:[%s1800_s4 + $0xa8] sm:$0xff]  ;;  %v967_v51 = vld [vmem:[%s1800_s4 + $0xb0] sm:$0xff]  ;;  %p1452_p0 = pnand %p1451_p13, %p1445_p10 }
  0x40   :  { %1251 = vmatpush3.bf16.msra.mxu0 %v1248_v9  ;;  %v1288_v50 = vpack.c.bf16 %v966_v49, %v965_v48  ;;  %v968_v52 = vld [vmem:[%s1800_s4 + $0xb8] sm:$0xff]  ;;  %v969_v54 = vld [vmem:[%s1800_s4 + $0xc0] sm:$0xff]  ;;  %v970_v55 = vld [vmem:[%s1800_s4 + $0xc8] sm:$0xff] }
  0x41   :  { %1253 = vmatprep.subr.bf16.mxu0 %v1252_v12  ;;  %v1292_v53 = vpack.c.bf16 %v968_v52, %v967_v51  ;;  %v1296_v56 = vpack.c.bf16 %v970_v55, %v969_v54  ;;  %v971_v57 = vld [vmem:[%s1800_s4 + $0xd0] sm:$0xff]  ;;  %v972_v58 = vld [vmem:[%s1800_s4 + $0xd8] sm:$0xff]  ;;  %v973_v60 = vld [vmem:[%s1800_s4 + $0xe0] sm:$0xff] }
  0x42   :  { %v1300_v59 = vpack.c.bf16 %v972_v58, %v971_v57  ;;  %v974_v61 = vld [vmem:[%s1800_s4 + $0xe8] sm:$0xff]  ;;  %v975_v63 = vld [vmem:[%s1800_s4 + $0xf0] sm:$0xff]  ;;  %v976_v0 = vld [vmem:[%s1800_s4 + $0xf8] sm:$0xff] }
  0x43   :  { %v1304_v62 = vpack.c.bf16 %v974_v61, %v973_v60  ;;  %v1308_v1 = vpack.c.bf16 %v976_v0, %v975_v63  ;;  %v958_v2 = vld [vmem:[%s1804_s8 + $0x1] ss:$0 sm:$0xff]  ;;  %v596_v10 = vld [vmem:[%s1801_s5 + $0x8] sm:$0xff]  ;;  %v598_v16 = vld [vmem:[%s1801_s5 + $0x18] sm:$0xff] }
  0x44   :  { %1255 = vmatpush3.bf16.msra.mxu0 %v1252_v12  ;;  %v595_v9 = vld [vmem:[%s1801_s5] sm:$0xff]  ;;  %v600_v19 = vld [vmem:[%s1801_s5 + $0x28] sm:$0xff]  ;;  %v602_v22 = vld [vmem:[%s1801_s5 + $0x38] sm:$0xff] }
  0x45   :  { %1257 = vmatprep.subr.bf16.mxu0 %v1256_v15  ;;  %v1316_v14 = vpack.c.bf16 %v596_v10, %v595_v9  ;;  %v607_v30 = vld [vmem:[%s1801_s5 + $0x60] sm:$0xff]  ;;  %v766_v48 = vld [vmem:[%s1802_s6 + $0x8] sm:$0xff]  ;;  %v767_v52 = vld [vmem:[%s1802_s6 + $0x10] sm:$0xff] }
  0x46   :  { %v769_v55 = vld [vmem:[%s1802_s6 + $0x20] sm:$0xff]  ;;  %v771_v58 = vld [vmem:[%s1802_s6 + $0x30] sm:$0xff]  ;;  %v853_v61 = vld [vmem:[#allocation7] sm:$0xff] }
  0x47   :  { %v980_v63 = vld [vmem:[%s1804_s8 + $0x3] ss:$0 sm:$0xff] }
  0x48   :  { %1259 = vmatpush3.bf16.msra.mxu0 %v1256_v15  ;;  %v597_v15 = vld [vmem:[%s1801_s5 + $0x10] sm:$0xff] }
  0x49   :  { %1261 = vmatprep.subr.bf16.mxu0 %v1260_v18  ;;  %v1320_v17 = vpack.c.bf16 %v598_v16, %v597_v15 }
  0x4c   :  { %1263 = vmatpush3.bf16.msra.mxu0 %v1260_v18  ;;  %v599_v18 = vld [vmem:[%s1801_s5 + $0x20] sm:$0xff] }
  0x4d   :  { %1265 = vmatprep.subr.bf16.mxu0 %v1264_v21  ;;  %v1324_v20 = vpack.c.bf16 %v600_v19, %v599_v18 }
  0x50   :  { %1267 = vmatpush3.bf16.msra.mxu0 %v1264_v21  ;;  %v601_v21 = vld [vmem:[%s1801_s5 + $0x30] sm:$0xff] }
  0x51   :  { %1269 = vmatprep.subr.bf16.mxu0 %v1268_v24  ;;  %v1328_v23 = vpack.c.bf16 %v602_v22, %v601_v21 }
  0x54   :  { %1271 = vmatpush3.bf16.msra.mxu0 %v1268_v24  ;;  %v603_v24 = vld [vmem:[%s1801_s5 + $0x40] sm:$0xff] }
  0x55   :  { %1273 = vmatprep.subr.bf16.mxu0 %v1272_v31 }
  0x58   :  { %1275 = vmatpush3.bf16.msra.mxu0 %v1272_v31  ;;  %v608_v31 = vld [vmem:[%s1801_s5 + $0x68] sm:$0xff] }
 0x10c   :  { %v1076_v25 = vpop.f32.mrb[0].mxu0 }
 0x10d   :  { %v150_v26 = vpop.f32.mrb[1].mxu0 }
 0x10e   :  { %v1240_v27 = vpack.c.bf16 %v1076_v25, %v150_v26  ;;  %v604_v25 = vld [vmem:[%s1801_s5 + $0x48] sm:$0xff] }
 0x10f   :  { %v1332_v26 = vpack.c.bf16 %v604_v25, %v603_v24 }
 0x110   :  { %1241 = vmatprep.subr.bf16.mxu1 %v1240_v27 }
 0x111   :  { %1243 = vmatpush3.bf16.msra.mxu1 %v1240_v27  ;;  %v605_v27 = vld [vmem:[%s1801_s5 + $0x50] sm:$0xff] }
 0x114   :  { %1082 = vmatmul.mubr.msk.f32.vlgmr.msra.gmra.mrb[0].mxu1 %vm164_vm1, %v1623_v28 }
 0x115   :  { %1123 = vmatprep.mubr.msk.f32.mxu1 %vm164_vm1, %v72_v3 }
 0x1e7   :  { %v1083_v33 = vpop.f32.mrb[0].mxu1 }
 0x1e8   :  { %v243_v34 = vadd.f32 %v1083_v33, %v955_v32  ;;  %v237_v35 = vpop.f32.mrb[1].mxu1  ;;  %v609_v33 = vld [vmem:[%s1801_s5 + $0x70] sm:$0xff] }
 0x1e9   :  { %v238_v36 = vadd.f32 %v955_v32, %v237_v35  ;;  %v1340_v32 = vpack.c.bf16 %v608_v31, %v607_v30 }
 0x1ea   :  { %v247_v38 = vmax.f32 %v243_v34, 0.0  ;;  %v610_v34 = vld [vmem:[%s1801_s5 + $0x78] sm:$0xff] }
 0x1eb   :  { %v246_v37 = vmax.f32 %v238_v36, 0.0  ;;  %v1344_v35 = vpack.c.bf16 %v610_v34, %v609_v33  ;;  %v977_v36 = vld [vmem:[%s1804_s8 + $0x2] ss:$0 sm:$0xff] }
 0x1ed   :  { %1116 = vmatprep.mubr.f32.mxu0 %v246_v37 }
 0x1ee   :  { %1117 = vmatmul.mubr.f32.vlgmr.msra.gmra.mrb[2].mxu0 %v247_v38 }
 0x1ef   :  { %1165 = vmatprep.mubr.msk.f32.mxu0 %vm164_vm1, %v72_v3 }
 0x2c1   :  { %v1118_v41 = vpop.f32.mrb[2].mxu0 }
 0x2c2   :  { %v330_v42 = vpop.f32.mrb[3].mxu0 }
 0x2c3   :  { %v1276_v43 = vpack.c.bf16 %v1118_v41, %v330_v42 }
 0x2c5   :  { %1277 = vmatprep.subr.bf16.mxu1 %v1276_v43 }
 0x2c6   :  { %1279 = vmatpush3.bf16.msra.mxu1 %v1276_v43  ;;  %v1477_v43 = vmov 0.0|0.0  }
 0x2c7   :  { %1281 = vmatprep.subr.bf16.mxu1 %v1280_v44 }
 0x2c9   :  { %1124 = vmatmul.mubr.msk.f32.vlgmr.msra.gmra.mrb[2].mxu1 %vm164_vm1, %v1623_v28 }
 0x2ca   :  { %1283 = vmatpush3.bf16.msra.mxu1 %v1280_v44  ;;  %v1479_v44 = vmov 0.0  }
 0x2cb   :  { %1285 = vmatprep.subr.bf16.mxu1 %v1284_v47 }
 0x2ce   :  { %1287 = vmatpush3.bf16.msra.mxu1 %v1284_v47  ;;  %v765_v47 = vld [vmem:[%s1802_s6] sm:$0xff] }
 0x2cf   :  { %1289 = vmatprep.subr.bf16.mxu1 %v1288_v50  ;;  %v1352_v51 = vpack.c.bf16 %v766_v48, %v765_v47 }
 0x2d2   :  { %1291 = vmatpush3.bf16.msra.mxu1 %v1288_v50  ;;  %v686_v50 = vld [vmem:[%s1798_s2] sm:$0xff] }
 0x2d3   :  { %1293 = vmatprep.subr.bf16.mxu1 %v1292_v53 }
 0x2d6   :  { %1295 = vmatpush3.bf16.msra.mxu1 %v1292_v53  ;;  %v768_v53 = vld [vmem:[%s1802_s6 + $0x18] sm:$0xff] }
 0x2d7   :  { %1297 = vmatprep.subr.bf16.mxu1 %v1296_v56  ;;  %v1355_v54 = vpack.c.bf16 %v768_v53, %v767_v52 }
 0x2da   :  { %1299 = vmatpush3.bf16.msra.mxu1 %v1296_v56  ;;  %v770_v56 = vld [vmem:[%s1802_s6 + $0x28] sm:$0xff] }
 0x2db   :  { %1301 = vmatprep.subr.bf16.mxu1 %v1300_v59  ;;  %v1358_v57 = vpack.c.bf16 %v770_v56, %v769_v55 }
 0x2de   :  { %1303 = vmatpush3.bf16.msra.mxu1 %v1300_v59  ;;  %v772_v59 = vld [vmem:[%s1802_s6 + $0x38] sm:$0xff] }
 0x2df   :  { %1305 = vmatprep.subr.bf16.mxu1 %v1304_v62  ;;  %v1361_v60 = vpack.c.bf16 %v772_v59, %v771_v58 }
 0x2e2   :  { %1307 = vmatpush3.bf16.msra.mxu1 %v1304_v62  ;;  %v854_v62 = vld [vmem:[#allocation7 + $0x8] sm:$0xff] }
 0x2e3   :  { %1309 = vmatprep.subr.bf16.mxu1 %v1308_v1 }
 0x2e6   :  { %1311 = vmatpush3.bf16.msra.mxu1 %v1308_v1  ;;  %v1364_v1 = vpack.c.bf16 %v854_v62, %v853_v61 }
 0x2e7   :  { %1348 = vmatprep.subr.bf16.mxu1 %v1477_v43 }
 0x39c   :  { %v1125_v3 = vpop.f32.mrb[2].mxu1 }
 0x39d   :  { %v416_v4 = vadd.f32 %v1125_v3, %v958_v2  ;;  %v410_v5 = vpop.f32.mrb[3].mxu1 }
 0x39e   :  { %v411_v6 = vadd.f32 %v958_v2, %v410_v5  ;;  %v856_v5 = vld [vmem:[#allocation7 + $0x18] sm:$0xff] }
 0x39f   :  { %v420_v8 = vmax.f32 %v416_v4, 0.0  ;;  %v855_v4 = vld [vmem:[#allocation7 + $0x10] sm:$0xff] }
 0x3a0   :  { %v419_v7 = vmax.f32 %v411_v6, 0.0  ;;  %v1367_v6 = vpack.c.bf16 %v856_v5, %v855_v4 }
 0x3a2   :  { %1158 = vmatprep.mubr.f32.mxu1 %v419_v7  ;;  %v982_v7 = vld [vmem:[%s1804_s8 + $0x4] ss:$0 sm:$0xff] }
 0x3a3   :  { %1159 = vmatmul.mubr.f32.vlgmr.msra.gmra.mrb[4].mxu1 %v420_v8 }
 0x3a4   :  { %1207 = vmatprep.mubr.msk.f32.mxu1 %vm1478_vm2, %v1479_v44 }
 0x476   :  { %v1160_v11 = vpop.f32.mrb[4].mxu1 }
 0x477   :  { %v504_v12 = vpop.f32.mrb[5].mxu1 }
 0x478   :  { %v1312_v13 = vpack.c.bf16 %v1160_v11, %v504_v12  ;;  %v984_v12 = vld [vmem:[%s1804_s8 + $0x5] ss:$0 sm:$0xff] }
 0x47a   :  { %1313 = vmatprep.subr.bf16.mxu0 %v1312_v13 }
 0x47b   :  { %1315 = vmatpush3.bf16.msra.mxu0 %v1312_v13 }
 0x47c   :  { %1317 = vmatprep.subr.bf16.mxu0 %v1316_v14 }
 0x47e   :  { %1166 = vmatmul.mubr.msk.f32.vlgmr.msra.gmra.mrb[4].mxu0 %vm164_vm1, %v1623_v28  ;;  %v606_v28 = vld [vmem:[%s1801_s5 + $0x58] sm:$0xff] }
 0x47f   :  { %1319 = vmatpush3.bf16.msra.mxu0 %v1316_v14  ;;  %v1336_v29 = vpack.c.bf16 %v606_v28, %v605_v27 }
 0x480   :  { %1321 = vmatprep.subr.bf16.mxu0 %v1320_v17 }
 0x483   :  { %1323 = vmatpush3.bf16.msra.mxu0 %v1320_v17 }
 0x484   :  { %1325 = vmatprep.subr.bf16.mxu0 %v1324_v20 }
 0x487   :  { %1327 = vmatpush3.bf16.msra.mxu0 %v1324_v20 }
 0x488   :  { %1329 = vmatprep.subr.bf16.mxu0 %v1328_v23 }
 0x48b   :  { %1331 = vmatpush3.bf16.msra.mxu0 %v1328_v23 }
 0x48c   :  { %1333 = vmatprep.subr.bf16.mxu0 %v1332_v26 }
 0x48f   :  { %1335 = vmatpush3.bf16.msra.mxu0 %v1332_v26 }
 0x490   :  { %1337 = vmatprep.subr.bf16.mxu0 %v1336_v29 }
 0x493   :  { %1339 = vmatpush3.bf16.msra.mxu0 %v1336_v29 }
 0x494   :  { %1341 = vmatprep.subr.bf16.mxu0 %v1340_v32 }
 0x497   :  { %1343 = vmatpush3.bf16.msra.mxu0 %v1340_v32 }
 0x498   :  { %1345 = vmatprep.subr.bf16.mxu0 %v1344_v35 }
 0x49b   :  { %1347 = vmatpush3.bf16.msra.mxu0 %v1344_v35 }
 0x551   :  { %v1167_v37 = vpop.f32.mrb[4].mxu0 }
 0x552   :  { %v590_v38 = vadd.f32 %v1167_v37, %v977_v36  ;;  %v584_v39 = vpop.f32.mrb[5].mxu0 }
 0x553   :  { %v585_v40 = vadd.f32 %v977_v36, %v584_v39 }
 0x554   :  { %v594_v42 = vmax.f32 %v590_v38, 0.0 }
 0x555   :  { %v593_v41 = vmax.f32 %v585_v40, 0.0 }
 0x557   :  { %1200 = vmatprep.mubr.f32.mxu0 %v593_v41 }
 0x558   :  { %1201 = vmatmul.mubr.f32.vlgmr.msra.gmra.mrb[6].mxu0 %v594_v42 }
 0x62b   :  { %v1202_v45 = vpop.f32.mrb[6].mxu0 }
 0x62c   :  { %v677_v46 = vpop.f32.mrb[7].mxu0 }
 0x62d   :  { %v1349_v49 = vpack.c.bf16 %v1202_v45, %v677_v46 }
 0x62f   :  { %1350 = vmatpush3.bf16.msra.mxu1 %v1349_v49 }
 0x630   :  { %1351 = vmatprep.subr.bf16.mxu1 %v1477_v43 }
 0x632   :  { %1208 = vmatmul.mubr.msk.f32.vlgmr.msra.gmra.mrb[6].mxu1 %vm164_vm1, %v686_v50 }
 0x633   :  { %1353 = vmatpush3.bf16.msra.mxu1 %v1352_v51  ;;  %1226 = vmatprep.mubr.msk.f32.mxu1 %vm1478_vm2, %v1479_v44 }
 0x634   :  { %1354 = vmatprep.subr.bf16.mxu1 %v1477_v43 }
 0x637   :  { %1356 = vmatpush3.bf16.msra.mxu1 %v1355_v54 }
 0x638   :  { %1357 = vmatprep.subr.bf16.mxu1 %v1477_v43 }
 0x63b   :  { %1359 = vmatpush3.bf16.msra.mxu1 %v1358_v57 }
 0x63c   :  { %1360 = vmatprep.subr.bf16.mxu1 %v1477_v43 }
 0x63f   :  { %1362 = vmatpush3.bf16.msra.mxu1 %v1361_v60 }
 0x640   :  { %1363 = vmatprep.subr.bf16.mxu1 %v1477_v43 }
 0x705   :  { %v761_v0 = vpop.f32.mrb[6].mxu1 }
 0x706   :  { %v762_v2 = vadd.f32 %v980_v63, %v761_v0  ;;  %v1209_v3 = vpop.f32.mrb[7].mxu1 }
 0x708   :  { %1227 = vmatmul.mubr.msk.f32.vlgmr.msra.gmra.mrb[8].mxu1 %vm778_vm3, %v762_v2 }
 0x709   :  { %1365 = vmatpush3.bf16.msra.mxu1 %v1364_v1  ;;  %1237 = vmatprep.mubr.msk.f32.mxu1 %vm1478_vm2, %v1479_v44 }
 0x70a   :  { %1366 = vmatprep.subr.bf16.mxu1 %v1477_v43 }
 0x70d   :  { %1368 = vmatpush3.bf16.msra.mxu1 %v1367_v6 }
 0x7db   :  { %v848_v8 = vpop.f32.mrb[8].mxu1 }
 0x7dc   :  { %v849_v9 = vadd.f32 %v982_v7, %v848_v8  ;;  %v1228_v10 = vpop.f32.mrb[9].mxu1 }
 0x7de   :  { %v852_v11 = vmax.f32 %v849_v9, 0.0 }
 0x7e0   :  { %1238 = vmatmul.mubr.msk.f32.vlgmr.msra.gmra.mrb[10].mxu1 %vm862_vm4, %v852_v11 }
 0x8b3   :  { %v932_v13 = vpop.f32.mrb[10].mxu1 }
 0x8b4   :  { %v933_v14 = vadd.f32 %v984_v12, %v932_v13  ;;  %v1239_v15 = vpop.f32.mrb[11].mxu1 }
 0x8b6   :  { %936 = vst [vmem:[#allocation8] sm:$0xff] %v933_v14 }
 0x8b7   :  { %1455 = shalt.err (!%p1452_p0)
}
 0x8b8   :  { %s1456_s5 = scalar_lea.hbm %s1805_s9, 128 }
 0x8b9   :  { %p1457_p1 = scmp.ne.s32.totalorder %s1805_s9, %s1456_s5  ;;  %p1460_p2 = scmp.lt.u32.totalorder %s1456_s5, %s1805_s9 }
 0x8bb   :  { %p1462_p3 = pnand %p1460_p2, %p1457_p1 }
 0x8bd   :  { %1465 = shalt.err (!%p1462_p3)
}
 0x8be   :  { %946 = dma.vmem_to_hbm [thread:$0]  %s944_s24, 128, %s1805_s9, [#allocation4]  }
 0x8bf   :  { %1470 = dma.done.wait [#allocation4], 128  }
 0x8c0   :  { %1471 = vsyncadd [#allocation4], 4294967168 }
 0x8c1   :  { %950 = vsyncpa [#allocation3], 1 }
 0x8c2   :  { %951 = vsyncpa [#allocation6], 1 }
 0x8c3   :  { %952 = vsyncpa [#allocation4], 1 }

</bundles_post_ra>
